<compile_context>
chip_gen: v7x
topology: tpu7x:2x2x1
jax: 0.10.0
libtpu: 0.0.40
codegen_flags: <defaults>
</compile_context>

<pallas_src>
import functools
import math

import jax
import jax.numpy as jnp
from jax import lax
from jax.experimental import pallas as pl
from jax.experimental.pallas import tpu as pltpu

NEG = -1e30                              # finite stand-in for -inf in log-space DP
_VMEM_LIMIT = 32 * 1024 * 1024           # safe on v5e/v6e (128 MiB) and v7x (64 MiB)
_TILE_BUDGET = 16 * 1024 * 1024          # target double-buffered block footprint


def _round_up(x, m):
    return ((x + m - 1) // m) * m


def _pick_row_tile(n_rows, n_cols, n_streams, budget=_TILE_BUDGET, cap=512):
    """Rows per block so `n_streams` double-buffered f32 (rows, n_cols) blocks fit
    in `budget` bytes; multiple of 8 (sublanes), capped, >= 8."""
    per_row = n_streams * 2 * n_cols * 4
    t = budget // max(per_row, 1)
    t = min(t, cap, _round_up(n_rows, 8))
    return int(max(8, (t // 8) * 8))


# --------------------------------------------------------------------------
# Pallas kernel 1: fused s-scale + log_softmax over the vocab axis (rows = T*B)
# --------------------------------------------------------------------------
def _log_softmax_kernel(x_ref, lp_ref, *, scale):
    z = x_ref[...].astype(jnp.float32) * scale            # fold s*logits into the kernel
    m = jnp.max(z, axis=-1, keepdims=True)
    e = jnp.exp(z - m)
    lse = m + jnp.log(jnp.sum(e, axis=-1, keepdims=True))
    lp_ref[...] = z - lse


def log_softmax_pallas(x2d, scale):
    R, V = x2d.shape
    tile_r = _pick_row_tile(R, V, n_streams=2)             # 1 input + 1 output stream
    kernel = functools.partial(_log_softmax_kernel, scale=float(scale))
    return pl.pallas_call(
        kernel,
        out_shape=jax.ShapeDtypeStruct((R, V), jnp.float32),
        grid=(pl.cdiv(R, tile_r),),
        in_specs=[pl.BlockSpec((tile_r, V), lambda i: (i, 0))],
        out_specs=pl.BlockSpec((tile_r, V), lambda i: (i, 0)),
        compiler_params=pltpu.CompilerParams(
            dimension_semantics=("parallel",),
            vmem_limit_bytes=_VMEM_LIMIT),
    )(x2d)


# --------------------------------------------------------------------------
# Pallas kernel 2: fused argmin-class selection + margin CE + il mask + sum.
# Inputs are (B, T, V) so the T tile sits on sublanes; grid (B par, T arb).
# --------------------------------------------------------------------------
def _margin_ce_kernel(il_ref, g_ref, lp_ref, ce_ref, *,
                      scaled_margin, margin_decay, eps, tile_t):
    b = pl.program_id(0)
    t = pl.program_id(1)

    g = g_ref[...]                                         # (tile_t, V)  CTC grad
    lp = lp_ref[...]                                       # (tile_t, V)  log_softmax(s*logits)
    p = jnp.exp(lp)
    ratio = g / jnp.maximum(p, eps)

    # first-occurrence argmin over V (matches torch.argmin semantics)
    n_v = ratio.shape[-1]
    rmin = jnp.min(ratio, axis=-1, keepdims=True)
    vidx = lax.broadcasted_iota(jnp.int32, ratio.shape, 1)
    amin = jnp.min(jnp.where(ratio == rmin, vidx, jnp.int32(n_v)),
                   axis=-1, keepdims=True)                 # (tile_t, 1)
    sel_mask = vidx == amin
    lp_sel = jnp.sum(jnp.where(sel_mask, lp, 0.0), axis=-1, keepdims=True)

    # margin neg-log-softmax at the selected class, via log-space algebra:
    #   -log_softmax(z - sm*onehot)_c = sm - lp_c + log(1 - p_c + p_c*exp(-sm))
    p_sel = jnp.exp(lp_sel)
    sel = scaled_margin - lp_sel + jnp.log((1.0 - p_sel) + p_sel * margin_decay)

    # keep rows with t < input_length[b]; also masks cdiv/garbage padding rows
    row = t * tile_t + lax.broadcasted_iota(jnp.int32, sel.shape, 0)
    contrib = jnp.where(row < il_ref[b], sel, 0.0)
    tile_sum = jnp.sum(contrib, axis=0, keepdims=True)     # (1, 1)

    @pl.when(t == 0)
    def _():
        ce_ref[...] = jnp.zeros_like(ce_ref)

    ce_ref[...] += tile_sum.reshape(1, 1, 1)               # broadcast into (1, 8, 128)


def margin_ce_pallas(grad_btv, lp_btv, input_lengths, scaled_margin, eps):
    B, T, V = grad_btv.shape
    tile_t = _pick_row_tile(T, V, n_streams=2)             # grad + log_probs streams
    kernel = functools.partial(
        _margin_ce_kernel,
        scaled_margin=float(scaled_margin),
        margin_decay=float(math.exp(-float(scaled_margin))),
        eps=float(eps), tile_t=tile_t)
    ce = pl.pallas_call(
        kernel,
        out_shape=jax.ShapeDtypeStruct((B, 8, 128), jnp.float32),
        grid_spec=pltpu.PrefetchScalarGridSpec(
            num_scalar_prefetch=1,
            grid=(B, pl.cdiv(T, tile_t)),
            in_specs=[pl.BlockSpec((None, tile_t, V), lambda b, t, il: (b, t, 0)),
                      pl.BlockSpec((None, tile_t, V), lambda b, t, il: (b, t, 0))],
            out_specs=pl.BlockSpec((1, 8, 128), lambda b, t, il: (b, 0, 0)),
        ),
        compiler_params=pltpu.CompilerParams(
            dimension_semantics=("parallel", "arbitrary"),
            vmem_limit_bytes=_VMEM_LIMIT),
    )(input_lengths.astype(jnp.int32), grad_btv, lp_btv)
    return ce[:, 0, 0]


# --------------------------------------------------------------------------
# CTC loss (blank=0, reduction='none', zero_infinity=True) plus the gradient
# PyTorch's nn.CTCLoss returns w.r.t. log_probs: grad = softmax - gamma,
# produced directly in (B, T, V) layout for the margin-CE kernel.
# TODO(synk): the sequential forward/backward DP (data-dependent gather over
# targets) has no clean Pallas tiling; it is kept in plain JAX lax.scan.
# --------------------------------------------------------------------------
def ctc_loss_and_grad(log_probs, lp_btv, targets_flat, target_lengths,
                      input_lengths, blank=0, need_grad=True):
    T, B, V = log_probs.shape
    tl = jnp.asarray(target_lengths, dtype=jnp.int32)
    Lmax = int(max(target_lengths))
    S = 2 * Lmax + 1

    # pad flattened targets to (B, Lmax)
    offsets = jnp.concatenate([jnp.zeros((1,), jnp.int32),
                               jnp.cumsum(tl)[:-1].astype(jnp.int32)])
    j = jnp.arange(Lmax)
    gidx = jnp.clip(offsets[:, None] + j[None, :], 0, targets_flat.shape[0] - 1)
    tgt = jnp.where(j[None, :] < tl[:, None], targets_flat[gidx], blank).astype(jnp.int32)

    # extended label sequence (blanks interleaved)
    ext = jnp.full((B, S), blank, jnp.int32).at[:, 1::2].set(tgt)
    s_idx = jnp.arange(S)[None, :]
    Sb = 2 * tl + 1
    state_valid = s_idx < Sb[:, None]
    ext_sm2 = jnp.concatenate([jnp.full((B, 2), -1, jnp.int32), ext[:, :-2]], axis=1)
    skip_ok = (s_idx >= 2) & (ext != blank) & (ext != ext_sm2)

    # emission log-probs gathered at extended labels: (T, B, S)
    lp_ext = jnp.take_along_axis(log_probs, jnp.broadcast_to(ext[None], (T, B, S)), axis=2)

    # ---- forward (alpha) ----
    a0 = jnp.full((B, S), NEG, jnp.float32)
    a0 = a0.at[:, 0].set(lp_ext[0, :, 0])
    a0 = a0.at[:, 1].set(jnp.where(tl > 0, lp_ext[0, :, 1], NEG))
    a0 = jnp.where(state_valid, a0, NEG)

    def fwd(prev, lp_t):
        sm1 = jnp.concatenate([jnp.full((B, 1), NEG, jnp.float32), prev[:, :-1]], axis=1)
        sm2 = jnp.concatenate([jnp.full((B, 2), NEG, jnp.float32), prev[:, :-2]], axis=1)
        cand = jnp.logaddexp(jnp.logaddexp(prev, sm1), jnp.where(skip_ok, sm2, NEG))
        a = jnp.where(state_valid, cand + lp_t, NEG)
        return a, a

    _, a_rest = lax.scan(fwd, a0, lp_ext[1:])
    alphas = jnp.concatenate([a0[None], a_rest], axis=0)           # (T, B, S)

    # per-sample log p(l|x), read at t = input_length - 1
    bidx = jnp.arange(B)
    a_end = alphas[input_lengths - 1, bidx]                        # (B, S)
    a1 = jnp.take_along_axis(a_end, (Sb - 1)[:, None], axis=1)[:, 0]
    a2 = jnp.take_along_axis(a_end, jnp.maximum(Sb - 2, 0)[:, None], axis=1)[:, 0]
    logp = jnp.logaddexp(a1, jnp.where(tl > 0, a2, NEG))
    finite = logp > NEG / 2
    loss = jnp.where(finite, -logp, 0.0)                           # zero_infinity=True

    if not need_grad:
        return loss, None

    # ---- backward (beta) ----
    allowed2 = jnp.concatenate([skip_ok[:, 2:], jnp.zeros((B, 2), bool)], axis=1)
    init_mask = (s_idx == (Sb - 1)[:, None]) | ((s_idx == (Sb - 2)[:, None]) & (tl > 0)[:, None])

    def bwd(nxt, inp):
        lp_t, t = inp
        sp1 = jnp.concatenate([nxt[:, 1:], jnp.full((B, 1), NEG, jnp.float32)], axis=1)
        sp2 = jnp.concatenate([nxt[:, 2:], jnp.full((B, 2), NEG, jnp.float32)], axis=1)
        cand = jnp.logaddexp(jnp.logaddexp(nxt, sp1), jnp.where(allowed2, sp2, NEG))
        rec = cand + lp_t
        is_last = (t == input_lengths - 1)[:, None]
        past = (t > input_lengths - 1)[:, None]
        b_t = jnp.where(is_last, jnp.where(init_mask, lp_t, NEG),
                        jnp.where(past, NEG, rec))
        b_t = jnp.where(state_valid, b_t, NEG)
        return b_t, b_t

    ts = jnp.arange(T)
    _, betas_rev = lax.scan(bwd, jnp.full((B, S), NEG, jnp.float32),
                            (lp_ext[::-1], ts[::-1]))
    betas = betas_rev[::-1]                                        # (T, B, S)

    # ---- PyTorch-style gradient w.r.t. log_probs: probs - gamma, in (B,T,V) ----
    logterm = alphas + betas - lp_ext - logp[None, :, None]
    contrib = jnp.exp(jnp.minimum(logterm, 30.0))                  # (T, B, S)
    ext_oh = jax.nn.one_hot(ext, V, dtype=jnp.float32)             # (B, S, V)
    # TODO(synk): K=S (~2*Lmax+1) is a poor MXU contraction; a segment-sum over S
    # into V (or a small Pallas kernel fusing `probs - gamma`) would cut this
    # remaining plain-JAX hot spot for large vocabularies.
    gamma_btv = jnp.einsum("tbs,bsv->btv", contrib, ext_oh)        # (B, T, V)
    t_mask_bt = jnp.arange(T)[None, :] < input_lengths[:, None]    # (B, T)
    keep = (t_mask_bt & finite[:, None])[..., None]
    grad_btv = jnp.where(keep, jnp.exp(lp_btv) - gamma_btv, 0.0)   # probs fused here
    return loss, grad_btv


# --------------------------------------------------------------------------
# DCTC forward (flatten=True path of the PyTorch module)
# --------------------------------------------------------------------------
def dctc_forward(logits, targets_flat, target_lengths, valid_ratios, *,
                 s=1.0, m=0.0, alpha=0.1, beta=1.0, eps=1e-8, blank=0,
                 reduction="mean", use_il=True):
    T, B, V = logits.shape
    scaled_margin = s * m

    if not use_il:
        valid_ratios = [1.0] * B
    input_lengths = jnp.asarray([min(int(math.ceil(T * r)), T) for r in valid_ratios],
                                dtype=jnp.int32)

    # hot path 1 (Pallas): fused s-scale + log_softmax over vocab
    log_probs = log_softmax_pallas(logits.reshape(T * B, V), s).reshape(T, B, V)

    need_grad = alpha > 0
    # layout plumbing for kernel 2 (T on sublanes); only needed when alpha > 0
    lp_btv = jnp.transpose(log_probs, (1, 0, 2)) if need_grad else None

    # CTC loss + PyTorch-convention grad of log_probs (plain JAX DP)
    ctc_loss_1, grad_btv = ctc_loss_and_grad(log_probs, lp_btv, targets_flat,
                                             target_lengths, input_lengths, blank,
                                             need_grad=need_grad)

    if need_grad:
        # hot path 2 (Pallas): argmin class + margin CE + il mask + sum, fused
        # in a single pass over grad and log_probs (no one-hot, no extra logits read)
        ce_loss = margin_ce_pallas(grad_btv, lp_btv, input_lengths, scaled_margin, eps)
    else:
        ce_loss = 0.0

    nll = alpha * ce_loss + beta * ctc_loss_1
    if reduction == "mean":
        return nll.mean()
    elif reduction == "sum":
        return nll.sum()
    return nll


if __name__ == "__main__":
    T, B, V = 8, 4, 128                      # seq_len, batch, vocab
    key = jax.random.PRNGKey(0)
    k_logits, k_tgt = jax.random.split(key)

    logits = jax.random.normal(k_logits, (T, B, V), dtype=jnp.float32)
    target_lengths = [3, 2, 4, 1]
    targets_flat = jax.random.randint(k_tgt, (sum(target_lengths),), 1, V,
                                      dtype=jnp.int32)     # labels in [1, V-1]
    valid_ratios = [1.0, 0.75, 0.9, 0.5]

    loss = dctc_forward(logits, targets_flat, target_lengths, valid_ratios,
                        s=2.0, m=0.1, alpha=0.1, beta=1.0, eps=1e-8,
                        blank=0, reduction="mean", use_il=True)
    loss = jax.block_until_ready(loss)
    assert bool(jnp.isfinite(loss)), loss
    print("KERNEL_OK")
</pallas_src>

<mosaic_0001>
module attributes {stable_mosaic.version = 11 : i64} {
  func.func @_log_softmax_kernel(%arg0: i32, %arg1: memref<32x128xf32, #tpu.memory_space<vmem>>, %arg2: memref<32x128xf32, #tpu.memory_space<vmem>>) attributes {dimension_semantics = [#tpu.dimension_semantics<parallel>], iteration_bounds = array<i64: 1>, scalar_prefetch = 0 : i64, scratch_operands = 0 : i64, tpu.core_type = #tpu.core_type<tc>, window_params = [{transform_indices = @transform_0, window_bounds = array<i64: 32, 128>}, {transform_indices = @transform_1, window_bounds = array<i64: 32, 128>}]} {
    %c0 = arith.constant 0 : index
    %c0_0 = arith.constant 0 : index
    %0 = vector.load %arg1[%c0, %c0_0] : memref<32x128xf32, #tpu.memory_space<vmem>>, vector<32x128xf32>
    %cst = arith.constant 2.000000e+00 : f32
    %1 = vector.broadcast %cst : f32 to vector<32x128xf32>
    %2 = arith.mulf %0, %1 : vector<32x128xf32>
    %cst_1 = arith.constant dense<0xFF800000> : vector<32xf32>
    %3 = vector.multi_reduction <maximumf>, %2, %cst_1 [1] : vector<32x128xf32> to vector<32xf32>
    %4 = vector.shape_cast %3 : vector<32xf32> to vector<32x1xf32>
    %5 = vector.broadcast %4 : vector<32x1xf32> to vector<32x128xf32>
    %6 = arith.subf %2, %5 : vector<32x128xf32>
    %7 = math.exp %6 : vector<32x128xf32>
    %cst_2 = arith.constant dense<0.000000e+00> : vector<32xf32>
    %8 = vector.multi_reduction <add>, %7, %cst_2 [1] : vector<32x128xf32> to vector<32xf32>
    %9 = vector.shape_cast %8 : vector<32xf32> to vector<32x1xf32>
    %10 = math.log %9 : vector<32x1xf32>
    %11 = arith.addf %4, %10 : vector<32x1xf32>
    %12 = vector.broadcast %11 : vector<32x1xf32> to vector<32x128xf32>
    %13 = arith.subf %2, %12 : vector<32x128xf32>
    %c0_3 = arith.constant 0 : index
    %c0_4 = arith.constant 0 : index
    %14 = vector.load %arg2[%c0_3, %c0_4] : memref<32x128xf32, #tpu.memory_space<vmem>>, vector<32x128xf32>
    tpu.vector_store %arg2[%c0_3, %c0_4], %13 {strides = array<i32>} : memref<32x128xf32, #tpu.memory_space<vmem>>, vector<32x128xf32>,
    return
  }
  func.func @transform_0(%arg0: i32) -> (i32, i32) {
    %c0_i32 = arith.constant 0 : i32
    %c0_i32_0 = arith.constant 0 : i32
    return %arg0, %c0_i32 : i32, i32
  }
  func.func @transform_1(%arg0: i32) -> (i32, i32) {
    %c0_i32 = arith.constant 0 : i32
    %c0_i32_0 = arith.constant 0 : i32
    return %arg0, %c0_i32 : i32, i32
  }
}

</mosaic_0001>

<bundles_post_ra>
// kernel: tpu_custom_call.1
= control target key start
LH: loop header
LB: loop body
LE: loop exit
PB: predicated region body
PF: predicated region fallthrough
CT: control target
= control target key end

     0   :  { %6 = vsyncpa [#allocation3], 0  ;;  %s208_s0 = inlined_call_operand.hbm [shape: f32[32,128], index: 0, kind: input, shape index: {}]   ;;  %s209_s1 = inlined_call_operand.hbm [shape: f32[32,128], index: 1, kind: output, shape index: {}]  }
   0x1   :  { %7 = vsyncpa [#allocation4], 0  ;;  %s164_s6 = smov [#allocation2]   ;;  %s116_s10 = scalar_lea.hbm %s208_s0, 512 }
   0x2   :  { %s13_s7 = sshll.u32 %s164_s6, 4  ;;  %p117_p0 = scmp.ne.s32.totalorder %s208_s0, %s116_s10  ;;  %s14_s7 = int_to_ptr.vmem [resolvable:$true] %s13_s7 }
   0x3   :  { %p120_p1 = scmp.lt.u32.totalorder %s116_s10, %s208_s0 }
   0x5   :  { %p122_p2 = pnand %p120_p1, %p117_p0 }
   0x7   :  { %125 = shalt.err (!%p122_p2)
}
   0x8   :  { %s126_s15 = scalar_lea.vmem %s14_s7, 512  ;;  %p131_p4 = scmp.lt.s32.totalorder %s14_s7, %s14_s7 }
   0x9   :  { %p127_p3 = scmp.ne.s32.totalorder %s14_s7, %s126_s15  ;;  %p132_p5 = scmp.lt.s32.totalorder %s126_s15, %s126_s15 }
   0xb   :  { %p133_p6 = por %p132_p5, %p131_p4 }
   0xd   :  { %p134_p7 = pnand %p133_p6, %p127_p3 }
   0xf   :  { %137 = shalt.err (!%p134_p7)
}
  0x10   :  { %s165_s16 = smov 128   ;;  %s166_s17 = smov 8  }
  0x11   :  { %19 = dma.hbm_to_vmem [thread:$0]  %s208_s0, 512, %s14_s7, [#allocation3], %s165_s16, %s165_s16, %s166_s17  }
  0x12   :  { %160 = dma.done.wait [#allocation3], 512  }
  0x13   :  { %161 = vsyncadd [#allocation3], 4294966784  ;;  %v23_v0 = vld [vmem:[#allocation2] sm:$0xff]  ;;  %v25_v1 = vld [vmem:[#allocation2 + $0x10] sm:$0xff]  ;;  %s167_s0 = smov [#allocation5]  }
  0x14   :  { %v24_v2 = vld [vmem:[#allocation2 + $0x8] sm:$0xff]  ;;  %v27_v3 = vmul.f32 2.0, %v23_v0  ;;  %v29_v4 = vmul.f32 2.0, %v25_v1  ;;  %v26_v5 = vld [vmem:[#allocation2 + $0x18] sm:$0xff]  ;;  %s84_s20 = sshll.u32 %s167_s0, 4  ;;  %s85_s20 = int_to_ptr.vmem [resolvable:$true] %s84_s20 }
  0x15   :  { %v28_v6 = vmul.f32 2.0, %v24_v2  ;;  %v30_v7 = vmul.f32 2.0, %v26_v5  ;;  %s138_s21 = scalar_lea.vmem %s85_s20, 512  ;;  %p143_p9 = scmp.lt.s32.totalorder %s85_s20, %s85_s20 }
  0x16   :  { %31 = vmax.xlane.f32.xlu0 %v27_v3  ;;  %35 = vmax.xlane.f32.xlu1 %v29_v4  ;;  %p139_p8 = scmp.ne.s32.totalorder %s85_s20, %s138_s21  ;;  %p144_p10 = scmp.lt.s32.totalorder %s138_s21, %s138_s21 }
  0x18   :  { %p145_p11 = por %p144_p10, %p143_p9 }
  0x1a   :  { %33 = vmax.xlane.f32.xlu0 %v28_v6  ;;  %37 = vmax.xlane.f32.xlu1 %v30_v7  ;;  %p146_p12 = pnand %p145_p11, %p139_p8 }
  0xa3   :  { %v32_v8 = vpop.xlane.xlu0 %31  ;;  %v36_v9 = vpop.xlane.xlu1 %35 }
  0xa4   :  { %v39_v10 = vsub.f32 %v27_v3, %v32_v8  ;;  %v41_v11 = vsub.f32 %v29_v4, %v36_v9 }
  0xa6   :  { %v43_v12 = vmul.f32 1.442695, %v39_v10  ;;  %v47_v13 = vmul.f32 1.442695, %v41_v11 }
  0xa7   :  { %v34_v14 = vpop.xlane.xlu0 %33  ;;  %v38_v15 = vpop.xlane.xlu1 %37 }
  0xa8   :  { %100 = vpow2.f32 %v43_v12  ;;  %v40_v16 = vsub.f32 %v28_v6, %v34_v14  ;;  %v42_v17 = vsub.f32 %v30_v7, %v38_v15 }
  0xa9   :  { %102 = vpow2.f32 %v47_v13 }
  0xaa   :  { %v45_v18 = vmul.f32 1.442695, %v40_v16  ;;  %v49_v19 = vmul.f32 1.442695, %v42_v17 }
  0xac   :  { %104 = vpow2.f32 %v45_v18 }
  0xad   :  { %106 = vpow2.f32 %v49_v19 }
  0xb2   :  { %v101_v20 = vpop.eup %100 }
  0xb3   :  { %51 = vadd.xlane.f32.xlu0 %v101_v20  ;;  %v103_v21 = vpop.eup %102 }
  0xb6   :  { %v105_v22 = vpop.eup %104 }
  0xb7   :  { %55 = vadd.xlane.f32.xlu0 %v103_v21  ;;  %53 = vadd.xlane.f32.xlu1 %v105_v22  ;;  %v107_v23 = vpop.eup %106 }
  0xbb   :  { %57 = vadd.xlane.f32.xlu1 %v107_v23 }
 0x140   :  { %v52_v24 = vpop.xlane.xlu0 %51 }
 0x141   :  { %108 = vlog2.f32 %v52_v24 }
 0x144   :  { %v54_v25 = vpop.xlane.xlu1 %53  ;;  %v56_v26 = vpop.xlane.xlu0 %55 }
 0x145   :  { %110 = vlog2.f32 %v54_v25 }
 0x146   :  { %112 = vlog2.f32 %v56_v26 }
 0x148   :  { %v58_v27 = vpop.xlane.xlu1 %57 }
 0x149   :  { %114 = vlog2.f32 %v58_v27 }
 0x14b   :  { %v109_v28 = vpop.eup %108 }
 0x14c   :  { %v60_v29 = vmul.f32 0.6931472, %v109_v28 }
 0x14e   :  { %v67_v30 = vadd.f32 %v60_v29, %v32_v8 }
 0x14f   :  { %v111_v31 = vpop.eup %110 }
 0x150   :  { %v113_v32 = vpop.eup %112  ;;  %v71_v33 = vsub.f32 %v27_v3, %v67_v30  ;;  %v62_v34 = vmul.f32 0.6931472, %v111_v31 }
 0x151   :  { %v64_v35 = vmul.f32 0.6931472, %v113_v32 }
 0x152   :  { %75 = vst [vmem:[#allocation5] sm:$0xff] %v71_v33  ;;  %v68_v36 = vadd.f32 %v62_v34, %v34_v14 }
 0x153   :  { %v115_v37 = vpop.eup %114  ;;  %v69_v38 = vadd.f32 %v64_v35, %v36_v9 }
 0x154   :  { %v72_v39 = vsub.f32 %v28_v6, %v68_v36  ;;  %v66_v40 = vmul.f32 0.6931472, %v115_v37 }
 0x155   :  { %v73_v41 = vsub.f32 %v29_v4, %v69_v38 }
 0x156   :  { %76 = vst [vmem:[#allocation5 + $0x8] sm:$0xff] %v72_v39  ;;  %v70_v42 = vadd.f32 %v66_v40, %v38_v15 }
 0x157   :  { %77 = vst [vmem:[#allocation5 + $0x10] sm:$0xff] %v73_v41 }
 0x158   :  { %v74_v43 = vsub.f32 %v30_v7, %v70_v42 }
 0x15a   :  { %78 = vst [vmem:[#allocation5 + $0x18] sm:$0xff] %v74_v43 }
 0x15b   :  { %149 = shalt.err (!%p146_p12)
}
 0x15c   :  { %s150_s24 = scalar_lea.hbm %s209_s1, 512 }
 0x15d   :  { %p151_p13 = scmp.ne.s32.totalorder %s209_s1, %s150_s24  ;;  %p154_p0 = scmp.lt.u32.totalorder %s150_s24, %s209_s1 }
 0x15f   :  { %p156_p1 = pnand %p154_p0, %p151_p13 }
 0x161   :  { %159 = shalt.err (!%p156_p1)
}
 0x162   :  { %90 = dma.vmem_to_hbm [thread:$0]  %s85_s20, 512, %s209_s1, [#allocation4], %s165_s16, %s165_s16, %s166_s17  }
 0x163   :  { %162 = dma.done.wait [#allocation4], 512  }
 0x164   :  { %163 = vsyncadd [#allocation4], 4294966784 }
 0x165   :  { %94 = vsyncpa [#allocation3], 1 }
 0x166   :  { %95 = vsyncpa [#allocation4], 1 }

</bundles_post_ra>
